<compile_context>
chip_gen: v6e
topology: v6e:2x2x1
jax: 0.10.0
libtpu: 0.0.40
codegen_flags: <defaults>
</compile_context>

<pallas_src>
import functools

import jax
import jax.numpy as jnp
import numpy as np
from jax.experimental import pallas as pl
from jax.experimental.pallas import tpu as pltpu

EPS = 1e-5
LANE = 128


def _ceil_to(x, m):
    return ((x + m - 1) // m) * m


def _pad2(a, rows, cols):
    r, c = a.shape
    return jnp.pad(a, ((0, rows - r), (0, cols - c)))


def _pack_w2(w2, mc, mcp):
    # w2 is (9*mc, mc), rows ordered (dy, dx, cin) -> (3, 3*mcp, mcp) so each dy
    # becomes one K=3*mcp matmul (dx folded into the contraction).
    w = w2.reshape(3, 3, mc, mc)
    w = jnp.pad(w, ((0, 0), (0, 0), (0, mcp - mc), (0, mcp - mc)))
    return w.reshape(3, 3 * mcp, mcp)


# ----------------------------- Pallas kernels ------------------------------ #
def _stage1_kernel(M, TM, mcp, has_proj, x_ref, w_ref, b_ref, *rest):
    """conv1 (1x1, stride folded into rows) fused with the projection-shortcut
    conv (single matmul against [w1|ws]) + per-tile BN partial stats."""
    if has_proj:
        y1_ref, s_ref, st1_ref, sts_ref = rest
    else:
        y1_ref, st1_ref = rest

    i = pl.program_id(0)
    rowmask = (jax.lax.broadcasted_iota(jnp.int32, (TM, 1), 0) + i * TM) < M

    x = x_ref[...].astype(jnp.bfloat16)
    res = jnp.dot(x, w_ref[...], preferred_element_type=jnp.float32) + b_ref[...]

    y1 = res[:, :mcp]
    y1_ref[...] = y1.astype(y1_ref.dtype)
    y1m = jnp.where(rowmask, y1, 0.0)
    st1_ref[0] = jnp.concatenate(
        [jnp.sum(y1m, axis=0, keepdims=True),
         jnp.sum(y1m * y1m, axis=0, keepdims=True)], axis=0)

    if has_proj:
        s = res[:, mcp:]
        s_ref[...] = s.astype(s_ref.dtype)
        sm = jnp.where(rowmask, s, 0.0)
        sts_ref[0] = jnp.concatenate(
            [jnp.sum(sm, axis=0, keepdims=True),
             jnp.sum(sm * sm, axis=0, keepdims=True)], axis=0)


def _conv3x3_kernel(Ho, Wo, y1_ref, sc1_ref, sh1_ref, w2_ref, b2_ref,
                    y2_ref, st2_ref, pad_ref, acc_ref):
    """bn1 affine + 3x3/pad-1 conv as 3 K-folded MXU matmuls on a halo'd image."""
    Wp = Wo + 2
    cout = w2_ref.shape[-1]
    nrows = Ho * Wp

    # Zero only the top / bottom halo rows; the interior rows (including their
    # left/right zero columns) are fully overwritten by the slab store below.
    pad_ref[0:Wp, :] = jnp.zeros((Wp, pad_ref.shape[-1]), pad_ref.dtype)
    pad_ref[(Ho + 1) * Wp:(Ho + 3) * Wp, :] = jnp.zeros(
        (2 * Wp, pad_ref.shape[-1]), pad_ref.dtype)

    # BN1 affine on the whole tile, one interior-slab store (Wp-wide rows).
    img = y1_ref[0].astype(jnp.float32) * sc1_ref[...] + sh1_ref[...]
    img = jnp.pad(img, ((0, 0), (1, 1), (0, 0)))               # (Ho, Wp, mcp)
    pad_ref[Wp:Wp + nrows, :] = img.reshape(nrows, -1).astype(pad_ref.dtype)

    # 3 matmuls of K=3*mcp, accumulated into an f32 VMEM scratch (no vreg spill
    # of a multi-MB live accumulator).
    for dy in range(3):
        lhs = jnp.concatenate(
            [pad_ref[dy * Wp + dx: dy * Wp + dx + nrows, :] for dx in range(3)],
            axis=-1)
        contrib = jnp.dot(lhs, w2_ref[dy], preferred_element_type=jnp.float32)
        if dy == 0:
            acc_ref[...] = contrib
        else:
            acc_ref[...] += contrib

    acc = acc_ref[...] + b2_ref[...]
    # One sliced store of the valid columns (w < Wo of each Wp-wide row).
    y2_ref[0] = acc.reshape(Ho, Wp, cout)[:, :Wo, :].astype(y2_ref.dtype)

    colmask = (jax.lax.broadcasted_iota(jnp.int32, (nrows, 1), 0) % Wp) < Wo
    accm = jnp.where(colmask, acc, 0.0)
    st2_ref[0] = jnp.concatenate(
        [jnp.sum(accm, axis=0, keepdims=True),
         jnp.sum(accm * accm, axis=0, keepdims=True)], axis=0)


def _stage3_kernel(M, TM, y2_ref, sc2_ref, sh2_ref, w3_ref, b3_ref,
                   y3_ref, st3_ref):
    """bn2 affine + conv3 (1x1) + per-tile BN partial stats."""
    i = pl.program_id(0)
    y2n = y2_ref[...].astype(jnp.float32) * sc2_ref[...] + sh2_ref[...]
    y3 = jnp.dot(y2n.astype(jnp.bfloat16), w3_ref[...],
                 preferred_element_type=jnp.float32) + b3_ref[...]
    y3_ref[...] = y3.astype(y3_ref.dtype)
    rowmask = (jax.lax.broadcasted_iota(jnp.int32, (TM, 1), 0) + i * TM) < M
    y3m = jnp.where(rowmask, y3, 0.0)
    st3_ref[0] = jnp.concatenate(
        [jnp.sum(y3m, axis=0, keepdims=True),
         jnp.sum(y3m * y3m, axis=0, keepdims=True)], axis=0)


def _stage4_kernel(has_proj, y3_ref, sc3_ref, sh3_ref, *rest):
    """bn3 affine + shortcut (+ its bn/relu) + add + relu. Pure elementwise."""
    if has_proj:
        s_ref, scs_ref, shs_ref, out_ref = rest
    else:
        xs_ref, out_ref = rest
    y3n = y3_ref[...].astype(jnp.float32) * sc3_ref[...] + sh3_ref[...]
    if has_proj:
        s = jnp.maximum(s_ref[...].astype(jnp.float32) * scs_ref[...]
                        + shs_ref[...], 0.0)
    else:
        s = xs_ref[...].astype(jnp.float32)     # f32 identity shortcut
    out_ref[...] = jnp.maximum(y3n + s, 0.0)


# ------------------------------- wrapper ----------------------------------- #
def _bn_affine(stat, gamma, beta, count):
    """BN training-mode scale/shift from per-channel (sum, sum_sq)."""
    mean = stat[0:1, :] / count
    var = jnp.maximum(stat[1:2, :] / count - mean * mean, 0.0)
    scale = gamma * jax.lax.rsqrt(var + EPS)
    shift = beta - mean * scale
    return scale, shift


def bottleneck_forward(x_nchw, params, ic, mc, oc, *, tile_m=None):
    (w1, b1, g1, be1, w2, b2, g2, be2, w3, b3, g3, be3, ws, bs, gs, bes) = params
    stride = 1 if ic == oc else 2
    has_proj = stride == 2
    N, C, H, W = x_nchw.shape
    assert C == ic
    Ho, Wo = (H + stride - 1) // stride, (W + stride - 1) // stride
    M = N * Ho * Wo

    icp, mcp, ocp = _ceil_to(ic, LANE), _ceil_to(mc, LANE), _ceil_to(oc, LANE)

    # Row tile: fill a ~12 MiB per-step working set (Pallas double-buffers it),
    # rounded to the bf16 sublane tile (16). Keeps double-buffered tiles well
    # under v7x's 64 MiB VMEM; v5e/v6e (128 MiB) have headroom.
    if tile_m is None:
        row_bytes = max(
            2 * (icp + mcp + (ocp if has_proj else 0)),                    # stage 1
            2 * (mcp + ocp),                                               # stage 3
            2 * ocp + 4 * ocp + (2 * ocp if has_proj else 4 * ocp))        # stage 4
        tile_m = max(256, min(4096, (12 << 20) // max(row_bytes, 1)))
    TM = _ceil_to(min(tile_m, M), 16)
    M_pad = _ceil_to(M, TM)
    nt = M_pad // TM

    # NCHW -> NHWC; a 1x1 stride-s conv == spatial subsampling of the input rows.
    x_nhwc = jnp.transpose(x_nchw, (0, 2, 3, 1))
    x_sub = x_nhwc[:, ::stride, ::stride, :].reshape(M, ic)
    if has_proj:
        x_flat = jnp.pad(x_sub, ((0, M_pad - M), (0, icp - ic))).astype(jnp.bfloat16)
    else:
        # identity shortcut: keep f32 so the residual add is full precision;
        # stage 1 casts to bf16 in-kernel.
        x_flat = jnp.pad(x_sub, ((0, M_pad - M), (0, icp - ic)))

    # zero-padded bf16 weights; f32 per-channel params (pad lanes stay exactly 0)
    w1p = _pad2(w1, icp, mcp).astype(jnp.bfloat16)
    w2p = _pack_w2(w2, mc, mcp).astype(jnp.bfloat16)
    w3p = _pad2(w3, mcp, ocp).astype(jnp.bfloat16)
    b1p, g1p, be1p = _pad2(b1, 1, mcp), _pad2(g1, 1, mcp), _pad2(be1, 1, mcp)
    b2p, g2p, be2p = _pad2(b2, 1, mcp), _pad2(g2, 1, mcp), _pad2(be2, 1, mcp)
    b3p, g3p, be3p = _pad2(b3, 1, ocp), _pad2(g3, 1, ocp), _pad2(be3, 1, ocp)
    if has_proj:
        wsp = _pad2(ws, icp, ocp).astype(jnp.bfloat16)
        bsp, gsp, besp = _pad2(bs, 1, ocp), _pad2(gs, 1, ocp), _pad2(bes, 1, ocp)
        wcat = jnp.concatenate([w1p, wsp], axis=1)         # (icp, mcp+ocp)
        bcat = jnp.concatenate([b1p, bsp], axis=1)
    else:
        wcat, bcat = w1p, b1p

    cparams = pltpu.CompilerParams(dimension_semantics=("parallel",),
                                   vmem_limit_bytes=64 * 1024 * 1024)

    row_spec = lambda c: pl.BlockSpec((TM, c), lambda i: (i, 0))
    const = lambda shape: pl.BlockSpec(shape, lambda i: (0,) * len(shape))
    stat_spec = lambda c: pl.BlockSpec((1, 2, c), lambda i: (i, 0, 0))

    # ---- stage 1: fused conv1 + projection shortcut conv + per-tile stats --- #
    wcols = mcp + ocp if has_proj else mcp
    in1 = [x_flat, wcat, bcat]
    in1_specs = [row_spec(icp), const((icp, wcols)), const((1, wcols))]
    out1_shapes = [jax.ShapeDtypeStruct((M_pad, mcp), jnp.bfloat16)]
    out1_specs = [row_spec(mcp)]
    if has_proj:
        out1_shapes.append(jax.ShapeDtypeStruct((M_pad, ocp), jnp.bfloat16))
        out1_specs.append(row_spec(ocp))
    out1_shapes.append(jax.ShapeDtypeStruct((nt, 2, mcp), jnp.float32))
    out1_specs.append(stat_spec(mcp))
    if has_proj:
        out1_shapes.append(jax.ShapeDtypeStruct((nt, 2, ocp), jnp.float32))
        out1_specs.append(stat_spec(ocp))

    res1 = pl.pallas_call(
        functools.partial(_stage1_kernel, M, TM, mcp, has_proj),
        grid=(nt,),
        in_specs=in1_specs,
        out_specs=tuple(out1_specs),
        out_shape=tuple(out1_shapes),
        compiler_params=cparams,
    )(*in1)
    if has_proj:
        y1_raw, s_raw, st1_part, sts_part = res1
    else:
        y1_raw, st1_part = res1
    sc1, sh1 = _bn_affine(jnp.sum(st1_part, axis=0), g1p, be1p, M)

    # ---- stage 2: bn1 + 3x3 conv (3 K-folded matmuls on halo'd VMEM tile) --- #
    Wp = Wo + 2
    y1_4d = y1_raw[:M].reshape(N, Ho, Wo, mcp)
    y2_raw, st2_part = pl.pallas_call(
        functools.partial(_conv3x3_kernel, Ho, Wo),
        grid=(N,),
        in_specs=[
            pl.BlockSpec((1, Ho, Wo, mcp), lambda n: (n, 0, 0, 0)),
            pl.BlockSpec((1, mcp), lambda n: (0, 0)),
            pl.BlockSpec((1, mcp), lambda n: (0, 0)),
            pl.BlockSpec((3, 3 * mcp, mcp), lambda n: (0, 0, 0)),
            pl.BlockSpec((1, mcp), lambda n: (0, 0)),
        ],
        out_specs=(
            pl.BlockSpec((1, Ho, Wo, mcp), lambda n: (n, 0, 0, 0)),
            pl.BlockSpec((1, 2, mcp), lambda n: (n, 0, 0)),
        ),
        out_shape=(
            jax.ShapeDtypeStruct((N, Ho, Wo, mcp), jnp.bfloat16),
            jax.ShapeDtypeStruct((N, 2, mcp), jnp.float32),
        ),
        scratch_shapes=[pltpu.VMEM(((Ho + 3) * Wp, mcp), jnp.bfloat16),
                        pltpu.VMEM((Ho * Wp, mcp), jnp.float32)],
        compiler_params=cparams,
    )(y1_4d, sc1, sh1, w2p, b2p)
    sc2, sh2 = _bn_affine(jnp.sum(st2_part, axis=0), g2p, be2p, M)

    # ---- stage 3: bn2 + conv3 (1x1) + per-tile stats ------------------------ #
    y2_flat = y2_raw.reshape(M, mcp)
    if M_pad != M:
        y2_flat = jnp.pad(y2_flat, ((0, M_pad - M), (0, 0)))
    y3_raw, st3_part = pl.pallas_call(
        functools.partial(_stage3_kernel, M, TM),
        grid=(nt,),
        in_specs=[row_spec(mcp), const((1, mcp)), const((1, mcp)),
                  const((mcp, ocp)), const((1, ocp))],
        out_specs=(row_spec(ocp), stat_spec(ocp)),
        out_shape=(jax.ShapeDtypeStruct((M_pad, ocp), jnp.bfloat16),
                   jax.ShapeDtypeStruct((nt, 2, ocp), jnp.float32)),
        compiler_params=cparams,
    )(y2_flat, sc2, sh2, w3p, b3p)
    sc3, sh3 = _bn_affine(jnp.sum(st3_part, axis=0), g3p, be3p, M)

    # ---- stage 4: bn3 + shortcut + add + relu (elementwise, parallel) ------- #
    in4 = [y3_raw, sc3, sh3]
    in4_specs = [row_spec(ocp), const((1, ocp)), const((1, ocp))]
    if has_proj:
        scs, shs = _bn_affine(jnp.sum(sts_part, axis=0), gsp, besp, M)
        in4 += [s_raw, scs, shs]
        in4_specs += [row_spec(ocp), const((1, ocp)), const((1, ocp))]
    else:
        in4 += [x_flat]                     # f32 identity shortcut (icp == ocp)
        in4_specs += [row_spec(ocp)]
    out_flat = pl.pallas_call(
        functools.partial(_stage4_kernel, has_proj),
        grid=(nt,),
        in_specs=in4_specs,
        out_specs=row_spec(ocp),
        out_shape=jax.ShapeDtypeStruct((M_pad, ocp), jnp.float32),
        compiler_params=cparams,
    )(*in4)

    out = out_flat[:M, :oc].reshape(N, Ho, Wo, oc)
    return jnp.transpose(out, (0, 3, 1, 2))


# --------------------------- pure-JAX reference ----------------------------- #
def reference_forward(x, params, ic, mc, oc):
    (w1, b1, g1, be1, w2, b2, g2, be2, w3, b3, g3, be3, ws, bs, gs, bes) = params
    stride = 1 if ic == oc else 2
    P = jax.lax.Precision.HIGHEST

    def conv(x, w_oihw, b, s, p):
        y = jax.lax.conv_general_dilated(
            x, w_oihw, (s, s), [(p, p), (p, p)],
            dimension_numbers=("NCHW", "OIHW", "NCHW"), precision=P)
        return y + b.reshape(1, -1, 1, 1)

    def bn(y, g, be):
        m = y.mean(axis=(0, 2, 3), keepdims=True)
        v = jnp.square(y - m).mean(axis=(0, 2, 3), keepdims=True)
        return (y - m) * jax.lax.rsqrt(v + EPS) * g.reshape(1, -1, 1, 1) \
            + be.reshape(1, -1, 1, 1)

    w1_o = w1.T.reshape(mc, ic, 1, 1)
    w2_o = w2.reshape(3, 3, mc, mc).transpose(3, 2, 0, 1)   # -> OIHW
    w3_o = w3.T.reshape(oc, mc, 1, 1)
    ws_o = ws.T.reshape(oc, ic, 1, 1)

    y = bn(conv(x, w1_o, b1, stride, 0), g1, be1)
    y = bn(conv(y, w2_o, b2, 1, 1), g2, be2)
    y = bn(conv(y, w3_o, b3, 1, 0), g3, be3)
    if stride == 2:
        sc = jax.nn.relu(bn(conv(x, ws_o, bs, 2, 0), gs, bes))
    else:
        sc = x
    return jax.nn.relu(y + sc)


def make_params(key, ic, mc, oc):
    ks = jax.random.split(key, 8)
    w1 = jax.random.normal(ks[0], (ic, mc), jnp.float32) * 0.1
    b1 = jax.random.normal(ks[1], (1, mc), jnp.float32) * 0.1
    w2 = jax.random.normal(ks[2], (9 * mc, mc), jnp.float32) * 0.1
    b2 = jax.random.normal(ks[3], (1, mc), jnp.float32) * 0.1
    w3 = jax.random.normal(ks[4], (mc, oc), jnp.float32) * 0.1
    b3 = jax.random.normal(ks[5], (1, oc), jnp.float32) * 0.1
    ws = jax.random.normal(ks[6], (ic, oc), jnp.float32) * 0.1
    bs = jax.random.normal(ks[7], (1, oc), jnp.float32) * 0.1
    g1, be1 = jnp.ones((1, mc), jnp.float32), jnp.zeros((1, mc), jnp.float32)
    g2, be2 = jnp.ones((1, mc), jnp.float32), jnp.zeros((1, mc), jnp.float32)
    g3, be3 = jnp.ones((1, oc), jnp.float32), jnp.zeros((1, oc), jnp.float32)
    gs, bes = jnp.ones((1, oc), jnp.float32), jnp.zeros((1, oc), jnp.float32)
    return (w1, b1, g1, be1, w2, b2, g2, be2, w3, b3, g3, be3, ws, bs, gs, bes)


if __name__ == "__main__":
    key = jax.random.PRNGKey(0)
    k_x1, k_p1, k_x2, k_p2 = jax.random.split(key, 4)

    # case 1: ic != oc -> stride 2 + projection shortcut; tile_m=64 forces
    # multiple row tiles, exercising the cross-tile BN-stat reduction path.
    ic, mc, oc = 4, 8, 16
    x1 = jax.random.normal(k_x1, (2, ic, 16, 16), jnp.float32)
    p1 = make_params(k_p1, ic, mc, oc)
    out1 = jax.block_until_ready(bottleneck_forward(x1, p1, ic, mc, oc, tile_m=64))
    ref1 = reference_forward(x1, p1, ic, mc, oc)
    assert out1.shape == (2, oc, 8, 8)
    np.testing.assert_allclose(np.asarray(out1), np.asarray(ref1),
                               rtol=5e-2, atol=5e-2)

    # case 2: ic == oc -> stride 1 + identity shortcut, auto tile_m (single tile).
    ic, mc, oc = 16, 8, 16
    x2 = jax.random.normal(k_x2, (2, ic, 16, 16), jnp.float32)
    p2 = make_params(k_p2, ic, mc, oc)
    out2 = jax.block_until_ready(bottleneck_forward(x2, p2, ic, mc, oc))
    ref2 = reference_forward(x2, p2, ic, mc, oc)
    assert out2.shape == (2, oc, 16, 16)
    np.testing.assert_allclose(np.asarray(out2), np.asarray(ref2),
                               rtol=5e-2, atol=5e-2)

    print("KERNEL_OK")
</pallas_src>

<mosaic_0001>
module attributes {stable_mosaic.version = 11 : i64} {
  func.func @_stage1_kernel(%arg0: i32, %arg1: memref<64x128xbf16, #tpu.memory_space<vmem>>, %arg2: memref<128x256xbf16, #tpu.memory_space<vmem>>, %arg3: memref<1x256xf32, #tpu.memory_space<vmem>>, %arg4: memref<64x128xbf16, #tpu.memory_space<vmem>>, %arg5: memref<64x128xbf16, #tpu.memory_space<vmem>>, %arg6: memref<1x2x128xf32, #tpu.memory_space<vmem>>, %arg7: memref<1x2x128xf32, #tpu.memory_space<vmem>>) attributes {dimension_semantics = [#tpu.dimension_semantics<parallel>], iteration_bounds = array<i64: 2>, scalar_prefetch = 0 : i64, scratch_operands = 0 : i64, tpu.core_type = #tpu.core_type<tc>, window_params = [{transform_indices = @transform_0, window_bounds = array<i64: 64, 128>}, {pipeline_mode = #tpu.pipeline_mode<synchronous>, transform_indices = @transform_1, window_bounds = array<i64: 128, 256>}, {pipeline_mode = #tpu.pipeline_mode<synchronous>, transform_indices = @transform_2, window_bounds = array<i64: 1, 256>}, {transform_indices = @transform_3, window_bounds = array<i64: 64, 128>}, {transform_indices = @transform_4, window_bounds = array<i64: 64, 128>}, {transform_indices = @transform_5, window_bounds = array<i64: 1, 2, 128>}, {transform_indices = @transform_6, window_bounds = array<i64: 1, 2, 128>}]} {
    %0 = tpu.iota {dimensions = array<i32: 0>} : vector<64x1xi32>
    %c64_i32 = arith.constant 64 : i32
    %1 = arith.muli %arg0, %c64_i32 : i32
    %2 = vector.broadcast %1 : i32 to vector<64x1xi32>
    %3 = arith.addi %0, %2 : vector<64x1xi32>
    %c128_i32 = arith.constant 128 : i32
    %4 = vector.broadcast %c128_i32 : i32 to vector<64x1xi32>
    %5 = arith.cmpi slt, %3, %4 : vector<64x1xi32>
    %c0 = arith.constant 0 : index
    %c0_0 = arith.constant 0 : index
    %6 = vector.load %arg1[%c0, %c0_0] : memref<64x128xbf16, #tpu.memory_space<vmem>>, vector<64x128xbf16>
    %c0_1 = arith.constant 0 : index
    %c0_2 = arith.constant 0 : index
    %7 = vector.load %arg2[%c0_1, %c0_2] : memref<128x256xbf16, #tpu.memory_space<vmem>>, vector<128x256xbf16>
    %cst = arith.constant dense<0.000000e+00> : vector<64x256xf32>
    %8 = tpu.matmul %6, %7, %cst {dimension_numbers = #tpu.dot_dimension_numbers<[1], [0], [0], [1], [0, 0, 1, 1], [], []>} : vector<64x128xbf16>, vector<128x256xbf16>, vector<64x256xf32> -> vector<64x256xf32>
    %c0_3 = arith.constant 0 : index
    %c0_4 = arith.constant 0 : index
    %9 = vector.load %arg3[%c0_3, %c0_4] : memref<1x256xf32, #tpu.memory_space<vmem>>, vector<1x256xf32>
    %10 = vector.broadcast %9 : vector<1x256xf32> to vector<64x256xf32>
    %11 = arith.addf %8, %10 : vector<64x256xf32>
    %12 = vector.extract_strided_slice %11 {offsets = [0, 0], sizes = [64, 128], strides = [1, 1]} : vector<64x256xf32> to vector<64x128xf32>
    %13 = arith.truncf %12 : vector<64x128xf32> to vector<64x128xbf16>
    %c0_5 = arith.constant 0 : index
    %c0_6 = arith.constant 0 : index
    %14 = vector.load %arg4[%c0_5, %c0_6] : memref<64x128xbf16, #tpu.memory_space<vmem>>, vector<64x128xbf16>
    tpu.vector_store %arg4[%c0_5, %c0_6], %13 {strides = array<i32>} : memref<64x128xbf16, #tpu.memory_space<vmem>>, vector<64x128xbf16>,
    %cst_7 = arith.constant 0.000000e+00 : f32
    %15 = vector.shape_cast %5 : vector<64x1xi1> to vector<64x1xi1>
    %16 = vector.broadcast %15 : vector<64x1xi1> to vector<64x128xi1>
    %17 = vector.broadcast %cst_7 : f32 to vector<64x128xf32>
    %18 = arith.select %16, %12, %17 : vector<64x128xi1>, vector<64x128xf32>
    %cst_8 = arith.constant dense<0.000000e+00> : vector<128xf32>
    %19 = vector.multi_reduction <add>, %18, %cst_8 [0] : vector<64x128xf32> to vector<128xf32>
    %20 = vector.shape_cast %19 : vector<128xf32> to vector<1x128xf32>
    %21 = arith.mulf %18, %18 : vector<64x128xf32>
    %cst_9 = arith.constant dense<0.000000e+00> : vector<128xf32>
    %22 = vector.multi_reduction <add>, %21, %cst_9 [0] : vector<64x128xf32> to vector<128xf32>
    %23 = vector.shape_cast %22 : vector<128xf32> to vector<1x128xf32>
    %24 = tpu.concatenate %20, %23 in 0 : vector<1x128xf32>, vector<1x128xf32> -> vector<2x128xf32>
    %c0_10 = arith.constant 0 : index
    %c0_11 = arith.constant 0 : index
    %c0_12 = arith.constant 0 : index
    %25 = vector.load %arg6[%c0_10, %c0_11, %c0_12] : memref<1x2x128xf32, #tpu.memory_space<vmem>>, vector<1x2x128xf32>
    %26 = vector.shape_cast %25 : vector<1x2x128xf32> to vector<2x128xf32>
    %27 = vector.shape_cast %24 : vector<2x128xf32> to vector<1x2x128xf32>
    tpu.vector_store %arg6[%c0_10, %c0_11, %c0_12], %27 {strides = array<i32>} : memref<1x2x128xf32, #tpu.memory_space<vmem>>, vector<1x2x128xf32>,
    %28 = vector.extract_strided_slice %11 {offsets = [0, 128], sizes = [64, 128], strides = [1, 1]} : vector<64x256xf32> to vector<64x128xf32>
    %29 = arith.truncf %28 : vector<64x128xf32> to vector<64x128xbf16>
    %c0_13 = arith.constant 0 : index
    %c0_14 = arith.constant 0 : index
    %30 = vector.load %arg5[%c0_13, %c0_14] : memref<64x128xbf16, #tpu.memory_space<vmem>>, vector<64x128xbf16>
    tpu.vector_store %arg5[%c0_13, %c0_14], %29 {strides = array<i32>} : memref<64x128xbf16, #tpu.memory_space<vmem>>, vector<64x128xbf16>,
    %cst_15 = arith.constant 0.000000e+00 : f32
    %31 = vector.shape_cast %5 : vector<64x1xi1> to vector<64x1xi1>
    %32 = vector.broadcast %31 : vector<64x1xi1> to vector<64x128xi1>
    %33 = vector.broadcast %cst_15 : f32 to vector<64x128xf32>
    %34 = arith.select %32, %28, %33 : vector<64x128xi1>, vector<64x128xf32>
    %cst_16 = arith.constant dense<0.000000e+00> : vector<128xf32>
    %35 = vector.multi_reduction <add>, %34, %cst_16 [0] : vector<64x128xf32> to vector<128xf32>
    %36 = vector.shape_cast %35 : vector<128xf32> to vector<1x128xf32>
    %37 = arith.mulf %34, %34 : vector<64x128xf32>
    %cst_17 = arith.constant dense<0.000000e+00> : vector<128xf32>
    %38 = vector.multi_reduction <add>, %37, %cst_17 [0] : vector<64x128xf32> to vector<128xf32>
    %39 = vector.shape_cast %38 : vector<128xf32> to vector<1x128xf32>
    %40 = tpu.concatenate %36, %39 in 0 : vector<1x128xf32>, vector<1x128xf32> -> vector<2x128xf32>
    %c0_18 = arith.constant 0 : index
    %c0_19 = arith.constant 0 : index
    %c0_20 = arith.constant 0 : index
    %41 = vector.load %arg7[%c0_18, %c0_19, %c0_20] : memref<1x2x128xf32, #tpu.memory_space<vmem>>, vector<1x2x128xf32>
    %42 = vector.shape_cast %41 : vector<1x2x128xf32> to vector<2x128xf32>
    %43 = vector.shape_cast %40 : vector<2x128xf32> to vector<1x2x128xf32>
    tpu.vector_store %arg7[%c0_18, %c0_19, %c0_20], %43 {strides = array<i32>} : memref<1x2x128xf32, #tpu.memory_space<vmem>>, vector<1x2x128xf32>,
    return
  }
  func.func @transform_0(%arg0: i32) -> (i32, i32) {
    %c0_i32 = arith.constant 0 : i32
    %c0_i32_0 = arith.constant 0 : i32
    return %arg0, %c0_i32 : i32, i32
  }
  func.func @transform_1(%arg0: i32) -> (i32, i32) {
    %c0_i32 = arith.constant 0 : i32
    %c0_i32_0 = arith.constant 0 : i32
    %c0_i32_1 = arith.constant 0 : i32
    return %c0_i32, %c0_i32_0 : i32, i32
  }
  func.func @transform_2(%arg0: i32) -> (i32, i32) {
    %c0_i32 = arith.constant 0 : i32
    %c0_i32_0 = arith.constant 0 : i32
    %c0_i32_1 = arith.constant 0 : i32
    return %c0_i32, %c0_i32_0 : i32, i32
  }
  func.func @transform_3(%arg0: i32) -> (i32, i32) {
    %c0_i32 = arith.constant 0 : i32
    %c0_i32_0 = arith.constant 0 : i32
    return %arg0, %c0_i32 : i32, i32
  }
  func.func @transform_4(%arg0: i32) -> (i32, i32) {
    %c0_i32 = arith.constant 0 : i32
    %c0_i32_0 = arith.constant 0 : i32
    return %arg0, %c0_i32 : i32, i32
  }
  func.func @transform_5(%arg0: i32) -> (i32, i32, i32) {
    %c0_i32 = arith.constant 0 : i32
    %c0_i32_0 = arith.constant 0 : i32
    %c0_i32_1 = arith.constant 0 : i32
    return %arg0, %c0_i32, %c0_i32_0 : i32, i32, i32
  }
  func.func @transform_6(%arg0: i32) -> (i32, i32, i32) {
    %c0_i32 = arith.constant 0 : i32
    %c0_i32_0 = arith.constant 0 : i32
    %c0_i32_1 = arith.constant 0 : i32
    return %arg0, %c0_i32, %c0_i32_0 : i32, i32, i32
  }
}

</mosaic_0001>

<bundles_post_ra>
// kernel: tpu_custom_call.1
= control target key start
LH: loop header
LB: loop body
LE: loop exit
PB: predicated region body
PF: predicated region fallthrough
CT: control target
= control target key end

     0   :  { %12 = vsyncpa [#allocation3], 0  ;;  %s1912_s0 = inlined_call_operand.hbm [shape: bf16[128,128], index: 0, kind: input, shape index: {}]   ;;  %s1913_s1 = inlined_call_operand.hbm [shape: bf16[128,256], index: 1, kind: input, shape index: {}]   ;;  %s1914_s2 = inlined_call_operand.vmem [shape: f32[1,256], index: 2, kind: input, shape index: {}]   ;;  %s1915_s3 = inlined_call_operand.hbm [shape: bf16[128,128], index: 3, kind: output, shape index: {0}]   ;;  %s1916_s4 = inlined_call_operand.hbm [shape: bf16[128,128], index: 4, kind: output, shape index: {1}]   ;;  %s1917_s5 = inlined_call_operand.hbm [shape: f32[2,2,128], index: 5, kind: output, shape index: {2}]   ;;  %s1918_s6 = inlined_call_operand.hbm [shape: f32[2,2,128], index: 6, kind: output, shape index: {3}]  }
   0x1   :  { %14 = vsyncpa [#allocation3 + $0x1], 0 }
   0x2   :  { %15 = vsyncpa [#allocation6], 0 }
   0x3   :  { %16 = vsyncpa [#allocation4], 0 }
   0x4   :  { %18 = vsyncpa [#allocation4 + $0x1], 0 }
   0x5   :  { %19 = vsyncpa [#allocation9], 0 }
   0x6   :  { %21 = vsyncpa [#allocation9 + $0x1], 0 }
   0x7   :  { %22 = vsyncpa [#allocation12], 0 }
   0x8   :  { %24 = vsyncpa [#allocation12 + $0x1], 0  ;;  %s1498_s21 = smov 0   ;;  %s1500_s22 = smov 0  }
   0x9   :  { %s1502_s23 = smov 0   ;;  %s1504_s24 = smov 0  }
   0xa LB: > { %s1519_s25 = sadd.s32 4294967295, %s1448_s24   ;;  %s1920_s26 = sadd.s32 4294967294, %s1448_s24   ;;  %s1448_s24 = sphi %s1504_s24, %s1944_s24   ;;  %s1444_s23 = sphi %s1502_s23, %s1943_s23   ;;  %s1440_s22 = sphi %s1500_s22, %s1942_s22   ;;  %s1436_s21 = sphi %s1498_s21, %s1941_s21  }
   0xb   : > { %p50_p0 = scmp.ne.s32.totalorder %s1440_s22, %s1436_s21  ;;  %p1919_p1 = scmp.eq.s32.totalorder %s1519_s25, 0 }
   0xc   : > { %p122_p3 = scmp.eq.s32.totalorder %s1920_s26, 1  ;;  %p990_p5 = scmp.ge.s32.totalorder %s1448_s24, 1 }
   0xd   : > { %p1530_p4 = por %p1919_p1, %p50_p0  ;;  %p207_p7 = scmp.lt.s32.totalorder %s1448_s24, 3 }
   0xe   : > { %p1535_p6 = por %p122_p3, %p50_p0  ;;  %s1450_s30 = smov [#allocation5]  }
   0xf   : > { %s1925_s27 = scalar_select %p1530_p4, 1, 0 }
  0x10   : > { %s1926_s28 = scalar_select %p1535_p6, 1, 0 }
  0x11   : > { %p1540_p8 = pnand %p990_p5, %p207_p7  ;;  %s219_s7 = sshll.u32 %s1450_s30, 4  ;;  %s220_s7 = int_to_ptr.vmem [resolvable:$true] %s219_s7 }
  0x12   : > { %s1554_s9 = sadd.s32 1, %s1448_s24   ;;  %s37_s10 = sadd.s32 1, %s1444_s23 }
  0x13   : > { %s1927_s29 = scalar_select %p1540_p8, 1, 0 }
  0x14   : > { %p1147_p9 = pneg %p1540_p8  ;;  %s34_s11 = ssub.s32 %s1448_s24, %s1554_s9 }
  0x15   : > { %s1251_s12 = scalar_lea.vmem %s220_s7, 2048  ;;  %p1259_p5 = scmp.lt.s32.totalorder %s220_s7, %s220_s7 }
  0x16   : > { %p1549_p11 = pnand %p1147_p9, %p1919_p1  ;;  %p1252_p13 = scmp.ne.s32.totalorder %s220_s7, %s1251_s12 }
  0x17   : > { %p1260_p7 = scmp.lt.s32.totalorder %s1251_s12, %s1251_s12 }
  0x18   : > { %p1242_p12 = pneg %p1549_p11 }
  0x19   : > { %p1261_p10 = por %p1260_p7, %p1259_p5 }
  0x1a   : > { %p1254_p0 = pnand %p1252_p13, %p1242_p12 }
  0x1c   : > { %p1255_p3 = pneg %p1254_p0 }
  0x1e   : > { %p1262_p2 = pnand %p1261_p10, %p1255_p3 }
  0x20   : > { %1265 = shalt.err (!%p1262_p2)
}
  0x21   : > { %s1451_s13 = smov 128   ;;  %s1452_s14 = smov 8  }
  0x22   : > { %1150 = dma.hbm_to_vmem [thread:$0]  (!%p1549_p11), %s1913_s1, 2048, %s220_s7, [#allocation6], %s1451_s13, %s1451_s13, %s1452_s14  }
  0x23   : > { %p35_p9 = scmp.eq.s32.totalorder %s34_s11, 0  ;;  %p44_p12 = scmp.ne.s32.totalorder %s1444_s23, %s1440_s22 }
  0x24   : > { %p45_p10 = scmp.eq.s32.totalorder %s1448_s24, 0  ;;  %p1169_p2 = scmp.lt.s32.totalorder %s1448_s24, 2 }
  0x25   : > { %s1571_s17 = scalar_select %p35_p9, %s1444_s23, %s37_s10  }
  0x26   : > { %p46_p13 = por %p45_p10, %p44_p12  ;;  %p1929_p0 = scmp.eq.s32.totalorder %s1519_s25, 1 }
  0x27   : > { %s236_s19 = sand.u32 1, %s1444_s23   ;;  %s1052_s20 = sshll.u32 %s1448_s24, 9 }
  0x28   : > { %p1575_p3 = por %p1929_p0, %p44_p12  ;;  %s993_s30 = sshll.u32 %s236_s19, 5 }
  0x29   : > { %s1584_s15 = scalar_lea.hbm %s1912_s0, %s1052_s20  ;;  %s240_s7 = scalar_lea.vmem [#allocation2], %s993_s30 }
  0x2a   : > { %s1930_s18 = scalar_select %p1575_p3, 1, 0 }
  0x2b   : > { %s247_s10 = sshll.u32 %s240_s7, 4  ;;  %p1586_p11 = pnand %p1169_p2, %p46_p13  ;;  %s1590_s10 = int_to_ptr.vmem [resolvable:$true] %s247_s10 }
  0x2c   : > { %s1592_s13 = scalar_lea.sflag [#allocation3], %s236_s19  ;;  %s1266_s14 = scalar_lea.hbm %s1584_s15, 512 }
  0x2d   : > { %p1267_p5 = scmp.ne.s32.totalorder %s1584_s15, %s1266_s14  ;;  %p1268_p7 = pneg %p1586_p11 }
  0x2e   : > { %s1271_s30 = scalar_lea.hbm %s1912_s0, 1024  ;;  %p1272_p10 = scmp.lt.s32.totalorder %s1584_s15, %s1912_s0 }
  0x2f   : > { %p1269_p9 = pnand %p1268_p7, %p1267_p5  ;;  %p1273_p2 = scmp.lt.s32.totalorder %s1271_s30, %s1266_s14 }
  0x31   : > { %p1270_p12 = pneg %p1269_p9  ;;  %p1274_p13 = por %p1273_p2, %p1272_p10 }
  0x33   : > { %p1275_p0 = pnand %p1274_p13, %p1270_p12 }
  0x35   : > { %1278 = shalt.err (!%p1275_p0)
}
  0x36   : > { %s1279_s19 = scalar_lea.vmem %s1590_s10, 512  ;;  %s1453_s7 = smov [#allocation2]  }
  0x37   : > { %p1280_p1 = scmp.ne.s32.totalorder %s1590_s10, %s1279_s19  ;;  %s1284_s26 = sshll.u32 %s1453_s7, 4  ;;  %s1285_s26 = int_to_ptr.vmem [resolvable:$false] %s1284_s26 }
  0x38   : > { %s1286_s16 = scalar_lea.vmem %s1285_s26, 1024  ;;  %p1287_p9 = scmp.lt.s32.totalorder %s1590_s10, %s1285_s26 }
  0x39   : > { %p1282_p6 = pnand %p1280_p1, %p1268_p7  ;;  %p1288_p3 = scmp.lt.s32.totalorder %s1286_s16, %s1279_s19 }
  0x3b   : > { %p1283_p5 = pneg %p1282_p6  ;;  %p1289_p4 = por %p1288_p3, %p1287_p9 }
  0x3d   : > { %p1290_p8 = pnand %p1289_p4, %p1283_p5 }
  0x3f   : > { %1293 = shalt.err (!%p1290_p8)
}
  0x40   : > { %s1454_s14 = smov 64   ;;  %s1455_s20 = smov 4  }
  0x41   : > { %1154 = dma.hbm_to_vmem [thread:$0]  (!%p1586_p11), %s1584_s15, 512, %s1590_s10, %s1592_s13, %s1454_s14, %s1454_s14, %s1455_s20  }
  0x42   : > { %p1932_p1 = scmp.ne.s32.totalorder %s1927_s29, 0 }
  0x43   : > { %s1616_s30 = sand.u32 (!%p1932_p1), 1, %s1440_s22   ;;  %p1933_p4 = scmp.ne.s32.totalorder (!%p1932_p1), %s1925_s27, 0 }
  0x44   : > { %259 = sbr.rel (%p1932_p1) target bundleno = 417 (0x1a1), region = 32  ;;  %s1619_s26 = sshll.u32 (!%p1932_p1), %s1616_s30, 5 }
  0x45   : > { %s262_s8 = scalar_lea.sflag (!%p1932_p1), [#allocation3], %s1616_s30  ;;  %s1623_s12 = scalar_lea.vmem (!%p1932_p1), [#allocation2], %s1619_s26 }
  0x49   : > { %1415 = dma.done.wait (%p1933_p4), %s262_s8, 512  }
  0x4a   : > { %1417 = vsyncadd (%p1933_p4), %s262_s8, 4294966784  ;;  %p1934_p6 = scmp.eq.s32.totalorder %s1519_s25, 0 }
  0x4c   : > { %1419 = dma.done.wait (%p1934_p6), [#allocation6], 2048   ;;  %p1935_p8 = pmov %p1934_p6 }
  0x4d   : > { %v1456_v0 = vmov 0   ;;  %v1212_v1 = vld [vmem:[#allocation5 + $0x74] ss:$8 sps:$4 sm:$0xff]   ;;  %v1214_v2 = vld [vmem:[#allocation5 + $0x70] ss:$8 sps:$4 sm:$0xff]   ;;  %v1236_v17 = vld [vmem:[%s1623_s12] sm:$0xff]   ;;  %v317_v21 = vlaneseq }
  0x4e   : > { %1421 = vsyncadd (%p1935_p8), [#allocation6], 4294965248  ;;  %516 = vmatprep.mubr.bf16.mxu0 %v1456_v0  ;;  %536 = vmatprep.mubr.bf16.mxu1 %v1456_v0  ;;  %v1215_v3 = vld [vmem:[#allocation5 + $0x64] ss:$8 sps:$4 sm:$0xff]   ;;  %v1217_v4 = vld [vmem:[#allocation5 + $0x60] ss:$8 sps:$4 sm:$0xff]  }
  0x4f   : > { %484 = vmatprep.subr.bf16.mxu0 %v1212_v1  ;;  %1117 = vmatprep.subr.bf16.mxu1 %v1212_v1  ;;  %v1218_v5 = vld [vmem:[#allocation5 + $0x54] ss:$8 sps:$4 sm:$0xff]   ;;  %v1220_v6 = vld [vmem:[#allocation5 + $0x50] ss:$8 sps:$4 sm:$0xff]   ;;  %v1221_v7 = vld [vmem:[#allocation5 + $0x44] ss:$8 sps:$4 sm:$0xff]  }
  0x50   : > { %485 = vmatpush1.bf16.msra.mxu0 %v1214_v2  ;;  %1125 = vmatpush1.bf16.msra.mxu1 %v1214_v2  ;;  %v1223_v8 = vld [vmem:[#allocation5 + $0x40] ss:$8 sps:$4 sm:$0xff]   ;;  %v1224_v9 = vld [vmem:[#allocation5 + $0x34] ss:$8 sps:$4 sm:$0xff]   ;;  %v1226_v10 = vld [vmem:[#allocation5 + $0x30] ss:$8 sps:$4 sm:$0xff]  }
  0x51   : > { %486 = vmatprep.subr.bf16.mxu0 %v1215_v3  ;;  %1118 = vmatprep.subr.bf16.mxu1 %v1215_v3  ;;  %v1227_v11 = vld [vmem:[#allocation5 + $0x24] ss:$8 sps:$4 sm:$0xff]   ;;  %v1229_v12 = vld [vmem:[#allocation5 + $0x20] ss:$8 sps:$4 sm:$0xff]   ;;  %v1230_v13 = vld [vmem:[#allocation5 + $0x14] ss:$8 sps:$4 sm:$0xff]  }
  0x52   : > { %v1232_v14 = vld [vmem:[#allocation5 + $0x10] ss:$8 sps:$4 sm:$0xff]   ;;  %v1233_v15 = vld [vmem:[#allocation5 + $0x4] ss:$8 sps:$4 sm:$0xff]   ;;  %v1235_v16 = vld [vmem:[#allocation5] ss:$8 sps:$4 sm:$0xff]  }
  0x53   : > { %v1237_v18 = vld [vmem:[%s1623_s12 + $0x10] sm:$0xff]   ;;  %v1238_v19 = vld [vmem:[%s1623_s12 + $0x8] sm:$0xff]   ;;  %v1239_v20 = vld [vmem:[%s1623_s12 + $0x18] sm:$0xff]   ;;  %v318_v22 = vshrl.u32 %v317_v21, 7  ;;  %s1003_s27 = sshll.u32 %s1519_s25, 6  ;;  %s1682_s10 = scalar_lea.vmem [#allocation7], %s1619_s26 }
  0x54   : > { %487 = vmatpush1.bf16.msra.mxu0 %v1217_v4  ;;  %1126 = vmatpush1.bf16.msra.mxu1 %v1217_v4  ;;  %v368_v24 = vld [vmem:[%s1914_s2] sm:$0x3]  ;;  %v327_v26 = vstv %s1003_s27  ;;  %s1697_s11 = scalar_lea.vmem [#allocation8], %s1619_s26  ;;  %s771_s13 = sshll.u32 %s1682_s10, 4  ;;  %s1722_s13 = int_to_ptr.vmem [resolvable:$true] %s771_s13 }
  0x55   : > { %488 = vmatprep.subr.bf16.mxu0 %v1218_v5  ;;  %1119 = vmatprep.subr.bf16.mxu1 %v1218_v5  ;;  %v372_v23 = vsub.s32 0, %v318_v22  ;;  %v322_v25 = vadd.s32 32, %v318_v22  ;;  %v376_v27 = vsub.s32 1, %v318_v22  ;;  %v319_v28 = vadd.s32 8, %v318_v22  ;;  %s787_s19 = sshll.u32 %s1697_s11, 4  ;;  %s747_s7 = sand.u32 1, %s1519_s25   ;;  %s1724_s19 = int_to_ptr.vmem [resolvable:$true] %s787_s19 }
  0x56   : > { %v323_v29 = vadd.s32 40, %v318_v22  ;;  %v320_v30 = vadd.s32 16, %v318_v22  ;;  %v328_v32 = vadd.s32 %v327_v26, %v318_v22  ;;  %v324_v34 = vadd.s32 48, %v318_v22  ;;  %s1069_s16 = sshll.u32 %s1519_s25, 9  ;;  %s1767_s29 = scalar_lea.sflag [#allocation9], %s747_s7 }
  0x57   : > { %v1641_v31 = vrot.slane %v368_v24, %v372_v23  ;;  %v332_v33 = vadd.s32 %v327_v26, %v322_v25  ;;  %v321_v35 = vadd.s32 24, %v318_v22  ;;  %v1643_v36 = vrot.slane %v368_v24, %v376_v27  ;;  %s1744_s26 = scalar_lea.hbm %s1916_s4, %s1069_s16  ;;  %s1752_s27 = scalar_lea.hbm %s1915_s3, %s1069_s16 }
  0x58   : > { %489 = vmatpush1.bf16.msra.mxu0 %v1220_v6  ;;  %1127 = vmatpush1.bf16.msra.mxu1 %v1220_v6  ;;  %v329_v39 = vadd.s32 %v327_v26, %v319_v28  ;;  %v1645_v40 = vadd.s32 %v327_v26, %v323_v29  ;;  %v1647_v41 = vadd.s32 %v327_v26, %v320_v30  ;;  %v325_v42 = vadd.s32 56, %v318_v22  ;;  %s1294_s15 = scalar_lea.vmem %s1724_s19, 512  ;;  %p1936_p11 = scmp.ne.s32.totalorder %s1930_s18, 0 }
  0x59   : > { %490 = vmatprep.subr.bf16.mxu0 %v1221_v7  ;;  %1120 = vmatprep.subr.bf16.mxu1 %v1221_v7  ;;  %vm336_vm0 = vcmp.lt.s32.totalorder %v328_v32, 128  ;;  %vm340_vm1 = vcmp.lt.s32.totalorder %v332_v33, 128  ;;  %v1651_v47 = vadd.s32 %v327_v26, %v324_v34  ;;  %v1653_v48 = vadd.s32 %v327_v26, %v321_v35  ;;  %p1295_p3 = scmp.ne.s32.totalorder %s1724_s19, %s1294_s15 }
  0x5a   : > { %vm337_vm2 = vcmp.lt.s32.totalorder %v329_v39, 128  ;;  %vm341_vm3 = vcmp.lt.s32.totalorder %v1645_v40, 128  ;;  %vm338_vm4 = vcmp.lt.s32.totalorder %v1647_v41, 128  ;;  %v1659_v53 = vadd.s32 %v327_v26, %v325_v42 }
  0x5b   : > { %vm342_vm5 = vcmp.lt.s32.totalorder %v1651_v47, 128  ;;  %vm339_vm6 = vcmp.lt.s32.totalorder %v1653_v48, 128  ;;  %p1296_p7 = pnand %p1295_p3, %p1936_p11 }
  0x5c   : > { %491 = vmatpush1.bf16.msra.mxu0 %v1223_v8  ;;  %1128 = vmatpush1.bf16.msra.mxu1 %v1223_v8  ;;  %vm343_vm7 = vcmp.lt.s32.totalorder %v1659_v53, 128 }
  0x5d   : > { %492 = vmatprep.subr.bf16.mxu0 %v1224_v9  ;;  %1121 = vmatprep.subr.bf16.mxu1 %v1224_v9  ;;  %p1297_p12 = pneg %p1296_p7 }
  0x60   : > { %493 = vmatpush1.bf16.msra.mxu0 %v1226_v10  ;;  %1129 = vmatpush1.bf16.msra.mxu1 %v1226_v10 }
  0x61   : > { %494 = vmatprep.subr.bf16.mxu0 %v1227_v11  ;;  %1122 = vmatprep.subr.bf16.mxu1 %v1227_v11 }
  0x64   : > { %495 = vmatpush1.bf16.msra.mxu0 %v1229_v12  ;;  %1130 = vmatpush1.bf16.msra.mxu1 %v1229_v12 }
  0x65   : > { %496 = vmatprep.subr.bf16.mxu0 %v1230_v13  ;;  %1123 = vmatprep.subr.bf16.mxu1 %v1230_v13 }
  0x68   : > { %497 = vmatpush1.bf16.msra.mxu0 %v1232_v14  ;;  %1131 = vmatpush1.bf16.msra.mxu1 %v1232_v14 }
  0x69   : > { %498 = vmatprep.subr.bf16.mxu0 %v1233_v15  ;;  %1124 = vmatprep.subr.bf16.mxu1 %v1233_v15 }
  0x6c   : > { %499 = vmatpush1.bf16.msra.mxu0 %v1235_v16  ;;  %1132 = vmatpush1.bf16.msra.mxu1 %v1235_v16 }
  0x6f   : > { %517 = vmatmul.mubr.bf16.vlgmr.msra.gmra.mxu0 %v1236_v17  ;;  %537 = vmatmul.mubr.bf16.vlgmr.msra.gmra.mxu1 %v1237_v18 }
  0x70   : > { %526 = vmatprep.mubr.bf16.mxu0 %v1456_v0  ;;  %546 = vmatprep.mubr.bf16.mxu1 %v1456_v0 }
  0x77   : > { %527 = vmatmul.mubr.bf16.gmra.mxu0 %v1238_v19  ;;  %547 = vmatmul.mubr.bf16.gmra.mxu1 %v1239_v20 }
 0x12f   : > { %v518_v37 = vpop.f32.mrf.mxu0  ;;  %v538_v38 = vpop.f32.mrf.mxu1 }
 0x130   : > { %v519_v43 = vadd.f32 %v518_v37, %v1641_v31  ;;  %v539_v44 = vadd.f32 %v538_v38, %v1641_v31 }
 0x131   : > { %v520_v45 = vpop.f32.mrf.mxu0  ;;  %v540_v46 = vpop.f32.mrf.mxu1 }
 0x132   : > { %v521_v49 = vadd.f32 %v520_v45, %v1643_v36  ;;  %v541_v50 = vadd.f32 %v540_v46, %v1643_v36  ;;  %v613_v54 = vsel %vm336_vm0, %v519_v43, 0.0  ;;  %v1663_v55 = vsel %vm340_vm1, %v539_v44, 0.0 }
 0x133   : > { %v522_v51 = vpop.f32.mrf.mxu0  ;;  %v542_v52 = vpop.f32.mrf.mxu1  ;;  %v634_v2 = vmul.f32 %v613_v54, %v613_v54  ;;  %v1677_v3 = vmul.f32 %v1663_v55, %v1663_v55 }
 0x134   : > { %v523_v56 = vadd.f32 %v522_v51, %v1641_v31  ;;  %v543_v57 = vadd.f32 %v542_v52, %v1641_v31  ;;  %v698_v58 = vsel %vm336_vm0, %v521_v49, 0.0  ;;  %v1669_v59 = vsel %vm340_vm1, %v541_v50, 0.0 }
 0x135   : > { %v524_v60 = vpop.f32.mrf.mxu0  ;;  %v544_v61 = vpop.f32.mrf.mxu1  ;;  %v719_v12 = vmul.f32 %v698_v58, %v698_v58  ;;  %v1694_v13 = vmul.f32 %v1669_v59, %v1669_v59 }
 0x136   : > { %v1074_v62 = vpack.c.bf16 %v523_v56, %v519_v43  ;;  %v614_v63 = vsel %vm337_vm2, %v523_v56, 0.0  ;;  %v525_v0 = vadd.f32 %v524_v60, %v1643_v36  ;;  %v1084_v1 = vpack.c.bf16 %v543_v57, %v539_v44 }
 0x137   : > { %v635_v4 = vmul.f32 %v614_v63, %v614_v63  ;;  %v528_v5 = vpop.f32.mrf.mxu0  ;;  %v545_v6 = vadd.f32 %v544_v61, %v1643_v36  ;;  %v548_v7 = vpop.f32.mrf.mxu1  ;;  %v1689_v10 = vsel %vm341_vm3, %v543_v57, 0.0  ;;  %v621_v18 = vadd.f32 %v614_v63, %v613_v54 }
 0x138   : > { %1075 = vst [vmem:[%s1682_s10] sm:$0xff] %v1074_v62   ;;  %v1094_v8 = vpack.c.bf16 %v525_v0, %v521_v49  ;;  %v699_v9 = vsel %vm337_vm2, %v525_v0, 0.0  ;;  %1112 = vst [vmem:[%s1682_s10 + $0x10] sm:$0xff] %v1084_v1   ;;  %v529_v11 = vadd.f32 %v528_v5, %v1641_v31  ;;  %v549_v21 = vadd.f32 %v548_v7, %v1641_v31 }
 0x139   : > { %v720_v14 = vmul.f32 %v699_v9, %v699_v9  ;;  %v1104_v15 = vpack.c.bf16 %v545_v6, %v541_v50  ;;  %v530_v16 = vpop.f32.mrf.mxu0  ;;  %v550_v17 = vpop.f32.mrf.mxu1  ;;  %v642_v22 = vadd.f32 %v635_v4, %v634_v2  ;;  %v706_v23 = vadd.f32 %v699_v9, %v698_v58 }
 0x13a   : > { %1095 = vst [vmem:[%s1697_s11] sm:$0xff] %v1094_v8   ;;  %v615_v19 = vsel %vm338_vm4, %v529_v11, 0.0  ;;  %v531_v20 = vadd.f32 %v530_v16, %v1643_v36  ;;  %v639_v24 = vmul.f32 %v1689_v10, %v1689_v10  ;;  %v703_v29 = vsel %vm341_vm3, %v545_v6, 0.0 }
 0x13b   : > { %v636_v25 = vmul.f32 %v615_v19, %v615_v19  ;;  %1115 = vst [vmem:[%s1697_s11 + $0x10] sm:$0xff] %v1104_v15   ;;  %v532_v26 = vpop.f32.mrf.mxu0  ;;  %v552_v27 = vpop.f32.mrf.mxu1  ;;  %v727_v28 = vadd.f32 %v720_v14, %v719_v12  ;;  %v622_v33 = vadd.f32 %v621_v18, %v615_v19  ;;  %v619_v35 = vsel %vm342_vm5, %v549_v21, 0.0 }
 0x13c   : > { %v700_v30 = vsel %vm338_vm4, %v531_v20, 0.0  ;;  %v533_v32 = vadd.f32 %v532_v26, %v1641_v31  ;;  %v551_v37 = vadd.f32 %v550_v17, %v1643_v36  ;;  %v553_v52 = vadd.f32 %v552_v27, %v1641_v31 }
 0x13d   : > { %v721_v34 = vmul.f32 %v700_v30, %v700_v30  ;;  %v534_v38 = vpop.f32.mrf.mxu0  ;;  %v554_v39 = vpop.f32.mrf.mxu1  ;;  %v643_v40 = vadd.f32 %v642_v22, %v636_v25  ;;  %v707_v44 = vadd.f32 %v706_v23, %v700_v30  ;;  %v1754_v0 = vmul.f32 %v703_v29, %v703_v29 }
 0x13e   : > { %v1079_v42 = vpack.c.bf16 %v533_v32, %v529_v11  ;;  %v616_v41 = vsel %vm339_vm6, %v533_v32, 0.0  ;;  %v535_v43 = vadd.f32 %v534_v38, %v1643_v36  ;;  %v555_v54 = vadd.f32 %v554_v39, %v1643_v36 }
 0x13f   : > { %v728_v45 = vadd.f32 %v727_v28, %v721_v34  ;;  %v623_v46 = vadd.f32 %v622_v33, %v616_v41  ;;  %v637_v49 = vmul.f32 %v616_v41, %v616_v41  ;;  %v1734_v61 = vsel %vm342_vm5, %v551_v37, 0.0 }
 0x140   : > { %1111 = vst [vmem:[%s1682_s10 + $0x8] sm:$0xff] %v1079_v42   ;;  %v1099_v50 = vpack.c.bf16 %v535_v43, %v531_v20  ;;  %v701_v51 = vsel %vm339_vm6, %v535_v43, 0.0  ;;  %v1089_v62 = vpack.c.bf16 %v553_v52, %v549_v21  ;;  %v1739_v48 = vsel %vm343_vm7, %v553_v52, 0.0 }
 0x141   : > { %v624_v56 = vadd.f32 %v623_v46, %v1663_v55  ;;  %v644_v57 = vadd.f32 %v643_v40, %v637_v49  ;;  %v708_v58 = vadd.f32 %v707_v44, %v701_v51  ;;  %v722_v60 = vmul.f32 %v701_v51, %v701_v51 }
 0x142   : > { %1114 = vst [vmem:[%s1697_s11 + $0x8] sm:$0xff] %v1099_v50   ;;  %v1109_v31 = vpack.c.bf16 %v555_v54, %v551_v37  ;;  %v1756_v1 = vmul.f32 %v619_v35, %v619_v35  ;;  %1113 = vst [vmem:[%s1682_s10 + $0x18] sm:$0xff] %v1089_v62   ;;  %v1762_v2 = vsel %vm343_vm7, %v555_v54, 0.0  ;;  %s1457_s10 = smov [#allocation8]  }
 0x143   : > { %v645_v36 = vadd.f32 %v644_v57, %v1677_v3  ;;  %v709_v47 = vadd.f32 %v708_v58, %v1669_v59  ;;  %v729_v55 = vadd.f32 %v728_v45, %v722_v60  ;;  %v625_v63 = vadd.f32 %v624_v56, %v1689_v10  ;;  %s1298_s16 = sshll.u32 %s1457_s10, 4  ;;  %s1299_s16 = int_to_ptr.vmem [resolvable:$false] %s1298_s16 }
 0x144   : > { %1116 = vst [vmem:[%s1697_s11 + $0x18] sm:$0xff] %v1109_v31   ;;  %s1300_s11 = scalar_lea.vmem %s1299_s16, 1024  ;;  %p1301_p10 = scmp.lt.s32.totalorder %s1724_s19, %s1299_s16 }
 0x145   : > { %v730_v59 = vadd.f32 %v729_v55, %v1694_v13  ;;  %v626_v3 = vadd.f32 %v625_v63, %v619_v35  ;;  %v646_v4 = vadd.f32 %v645_v36, %v639_v24  ;;  %v710_v5 = vadd.f32 %v709_v47, %v703_v29  ;;  %p1302_p2 = scmp.lt.s32.totalorder %s1300_s11, %s1294_s15 }
 0x147   : > { %p1303_p13 = por %p1302_p2, %p1301_p10 }
 0x149   : > { %p1304_p0 = pnand %p1303_p13, %p1297_p12 }
 0x14b   : > { %1307 = shalt.err (!%p1304_p0)
}
 0x14c   : > { %s1308_s7 = scalar_lea.hbm %s1744_s26, 512  ;;  %s1312_s8 = scalar_lea.hbm %s1916_s4, 1024 }
 0x14d   : > { %p1309_p5 = scmp.ne.s32.totalorder %s1744_s26, %s1308_s7  ;;  %p1313_p4 = scmp.lt.s32.totalorder %s1744_s26, %s1916_s4 }
 0x14e   : > { %p1314_p6 = scmp.lt.s32.totalorder %s1312_s8, %s1308_s7 }
 0x14f   : > { %p1310_p9 = pnand %p1309_p5, %p1936_p11 }
 0x150   : > { %p1315_p8 = por %p1314_p6, %p1313_p4 }
 0x151   : > { %p1311_p1 = pneg %p1310_p9 }
 0x153   : > { %p1316_p3 = pnand %p1315_p8, %p1311_p1 }
 0x155   : > { %1319 = shalt.err (!%p1316_p3)
}
 0x156   : > { %s1924_s15 = smov 64   ;;  %s1459_s16 = smov 4   ;;  %v725_v53 = vmul.f32 %v1734_v61, %v1734_v61  ;;  %v641_v6 = vmul.f32 %v1739_v48, %v1739_v48 }
 0x157   : > { %1140 = dma.vmem_to_hbm [thread:$0]  (%p1936_p11), %s1724_s19, 512, %s1744_s26, %s1767_s29, %s1924_s15, %s1924_s15, %s1459_s16  }
 0x158   : > { %s743_s11 = scalar_lea.sflag [#allocation4], %s1616_s30  ;;  %s1320_s7 = scalar_lea.vmem %s1722_s13, 512 }
 0x159   : > { %p1321_p7 = scmp.ne.s32.totalorder %s1722_s13, %s1320_s7  ;;  %s1460_s14 = smov [#allocation7]  }
 0x15a   : > { %s1324_s20 = sshll.u32 %s1460_s14, 4  ;;  %s1325_s20 = int_to_ptr.vmem [resolvable:$false] %s1324_s20 }
 0x15b   : > { %p1322_p12 = pnand %p1321_p7, %p1936_p11  ;;  %s1326_s8 = scalar_lea.vmem %s1325_s20, 1024 }
 0x15c   : > { %p1327_p2 = scmp.lt.s32.totalorder %s1722_s13, %s1325_s20  ;;  %p1328_p13 = scmp.lt.s32.totalorder %s1326_s8, %s1320_s7 }
 0x15d   : > { %p1323_p10 = pneg %p1322_p12 }
 0x15e   : > { %p1329_p0 = por %p1328_p13, %p1327_p2 }
 0x160   : > { %p1330_p5 = pnand %p1329_p0, %p1323_p10 }
 0x162   : > { %1333 = shalt.err (!%p1330_p5)
}
 0x163   : > { %s1334_s19 = scalar_lea.hbm %s1752_s27, 512  ;;  %s1338_s10 = scalar_lea.hbm %s1915_s3, 1024 }
 0x164   : > { %p1335_p9 = scmp.ne.s32.totalorder %s1752_s27, %s1334_s19  ;;  %p1339_p6 = scmp.lt.s32.totalorder %s1752_s27, %s1915_s3 }
 0x165   : > { %p1340_p8 = scmp.lt.s32.totalorder %s1338_s10, %s1334_s19 }
 0x166   : > { %p1336_p1 = pnand %p1335_p9, %p1936_p11 }
 0x167   : > { %p1341_p3 = por %p1340_p8, %p1339_p6 }
 0x168   : > { %p1337_p4 = pneg %p1336_p1 }
 0x16a   : > { %p1342_p7 = pnand %p1341_p3, %p1337_p4 }
 0x16c   : > { %1345 = shalt.err (!%p1342_p7)
}
 0x16d   : > { %s1937_s7 = smov 64   ;;  %v627_v7 = vadd.f32 %v626_v3, %v1739_v48  ;;  %v647_v8 = vadd.f32 %v646_v4, %v1756_v1  ;;  %v711_v9 = vadd.f32 %v710_v5, %v1734_v61  ;;  %v731_v10 = vadd.f32 %v730_v59, %v1754_v0 }
 0x16e   : > { %1139 = dma.vmem_to_hbm [thread:$0]  (%p1936_p11), %s1722_s13, 512, %s1752_s27, %s743_s11, %s1937_s7, %s1937_s7, %s1459_s16   ;;  %v726_v11 = vmul.f32 %v1762_v2, %v1762_v2  ;;  %vm655_vm8 = vcmask 1040384  }
 0x16f   : > { %v628_v12 = vrot.slane %v627_v7, 4  ;;  %v648_v13 = vadd.f32 %v647_v8, %v641_v6  ;;  %v712_v14 = vadd.f32 %v711_v9, %v1762_v2  ;;  %v732_v15 = vadd.f32 %v731_v10, %v725_v53  ;;  %s1001_s13 = sshll.u32 %s1616_s30, 1  ;;  %s1048_s27 = sshll.u32 %s1519_s25, 5 }
 0x170   : > { %s305_s15 = scalar_lea.vmem [#allocation10], %s1001_s13  ;;  %s1830_s11 = scalar_lea.vmem [#allocation11], %s1001_s13 }
 0x171   : > { %v629_v16 = vadd.f32 %v628_v12, %v627_v7  ;;  %v649_v17 = vrot.slane %v648_v13, 4  ;;  %v713_v18 = vrot.slane %v712_v14, 4  ;;  %v733_v19 = vadd.f32 %v732_v15, %v726_v11  ;;  %s803_s16 = sshll.u32 %s305_s15, 4  ;;  %s816_s20 = sshll.u32 %s1830_s11, 4  ;;  %s1838_s16 = int_to_ptr.vmem [resolvable:$true] %s803_s16  ;;  %s1846_s20 = int_to_ptr.vmem [resolvable:$true] %s816_s20 }
 0x172   : > { %s1836_s26 = scalar_lea.hbm %s1917_s5, %s1048_s27  ;;  %s1844_s10 = scalar_lea.hbm %s1918_s6, %s1048_s27 }
 0x173   : > { %v630_v20 = vrot.slane %v629_v16, 2  ;;  %v650_v21 = vadd.f32 %v649_v17, %v648_v13  ;;  %v714_v22 = vadd.f32 %v713_v18, %v712_v14  ;;  %v734_v23 = vrot.slane %v733_v19, 4  ;;  %s1346_s14 = scalar_lea.vmem %s1838_s16, 32  ;;  %s1461_s7 = smov [#allocation10]  }
 0x174   : > { %p1347_p12 = scmp.ne.s32.totalorder %s1838_s16, %s1346_s14  ;;  %s1350_s13 = sshll.u32 %s1461_s7, 4  ;;  %s1351_s13 = int_to_ptr.vmem [resolvable:$false] %s1350_s13 }
 0x175   : > { %v631_v24 = vadd.f32 %v630_v20, %v629_v16  ;;  %v651_v25 = vrot.slane %v650_v21, 2  ;;  %v715_v26 = vrot.slane %v714_v22, 2  ;;  %v735_v27 = vadd.f32 %v734_v23, %v733_v19  ;;  %s1352_s8 = scalar_lea.vmem %s1351_s13, 64  ;;  %p1353_p13 = scmp.lt.s32.totalorder %s1838_s16, %s1351_s13 }
 0x176   : > { %p1348_p10 = pnand %p1347_p12, %p1936_p11  ;;  %p1354_p0 = scmp.lt.s32.totalorder %s1352_s8, %s1346_s14 }
 0x177   : > { %v632_v28 = vrot.slane %v631_v24, 1  ;;  %v652_v29 = vadd.f32 %v651_v25, %v650_v21  ;;  %v716_v30 = vadd.f32 %v715_v26, %v714_v22  ;;  %v736_v32 = vrot.slane %v735_v27, 2 }
 0x178   : > { %p1349_p2 = pneg %p1348_p10  ;;  %p1355_p5 = por %p1354_p0, %p1353_p13 }
 0x179   : > { %v653_v33 = vrot.slane %v652_v29, 1  ;;  %v717_v34 = vrot.slane %v716_v30, 1  ;;  %v737_v35 = vadd.f32 %v736_v32, %v735_v27  ;;  %v633_v37 = vadd.f32 %v632_v28, %v631_v24 }
 0x17a   : > { %p1356_p9 = pnand %p1355_p5, %p1349_p2 }
 0x17b   : > { %v654_v38 = vadd.f32 %v653_v33, %v652_v29  ;;  %v738_v39 = vrot.slane %v737_v35, 1  ;;  %v718_v40 = vadd.f32 %v717_v34, %v716_v30 }
 0x17d   : > { %v739_v42 = vadd.f32 %v738_v39, %v737_v35  ;;  %v656_v41 = vsel %vm655_vm8, %v633_v37, %v654_v38 }
 0x17e   : > { %657 = vst [vmem:[%s305_s15] sm:$0x3] %v656_v41 }
 0x17f   : > { %1359 = shalt.err (!%p1356_p9)
}
 0x180   : > { %s1360_s27 = scalar_lea.hbm %s1836_s26, 32  ;;  %s1364_s25 = scalar_lea.hbm %s1917_s5, 64 }
 0x181   : > { %p1361_p1 = scmp.ne.s32.totalorder %s1836_s26, %s1360_s27  ;;  %p1365_p8 = scmp.lt.s32.totalorder %s1836_s26, %s1917_s5 }
 0x182   : > { %p1366_p3 = scmp.lt.s32.totalorder %s1364_s25, %s1360_s27 }
 0x183   : > { %p1362_p4 = pnand %p1361_p1, %p1936_p11 }
 0x184   : > { %p1367_p7 = por %p1366_p3, %p1365_p8 }
 0x185   : > { %p1363_p6 = pneg %p1362_p4 }
 0x187   : > { %p1368_p12 = pnand %p1367_p7, %p1363_p6 }
 0x189   : > { %1371 = shalt.err (!%p1368_p12)
}
 0x18a   : > { %1141 = dma.vmem_to_hbm [thread:$0]  (%p1936_p11), %s1838_s16, 32, %s1836_s26, %s1767_s29   ;;  %v740_v43 = vsel %vm655_vm8, %v718_v40, %v739_v42 }
 0x18b   : > { %741 = vst [vmem:[%s1830_s11] sm:$0x3] %v740_v43  ;;  %s758_s14 = scalar_lea.sflag [#allocation12], %s1616_s30  ;;  %s1372_s13 = scalar_lea.vmem %s1846_s20, 32 }
 0x18c   : > { %p1373_p10 = scmp.ne.s32.totalorder %s1846_s20, %s1372_s13  ;;  %s1462_s8 = smov [#allocation11]  }
 0x18d   : > { %s1376_s27 = sshll.u32 %s1462_s8, 4  ;;  %s1377_s27 = int_to_ptr.vmem [resolvable:$false] %s1376_s27 }
 0x18e   : > { %p1374_p2 = pnand %p1373_p10, %p1936_p11  ;;  %s1378_s15 = scalar_lea.vmem %s1377_s27, 64 }
 0x18f   : > { %p1379_p0 = scmp.lt.s32.totalorder %s1846_s20, %s1377_s27  ;;  %p1380_p5 = scmp.lt.s32.totalorder %s1378_s15, %s1372_s13 }
 0x190   : > { %p1375_p13 = pneg %p1374_p2 }
 0x191   : > { %p1381_p9 = por %p1380_p5, %p1379_p0 }
 0x193   : > { %p1382_p1 = pnand %p1381_p9, %p1375_p13 }
 0x195   : > { %1385 = shalt.err (!%p1382_p1)
}
 0x196   : > { %s1386_s29 = scalar_lea.hbm %s1844_s10, 32  ;;  %s1390_s11 = scalar_lea.hbm %s1918_s6, 64 }
 0x197   : > { %p1387_p4 = scmp.ne.s32.totalorder %s1844_s10, %s1386_s29  ;;  %p1391_p3 = scmp.lt.s32.totalorder %s1844_s10, %s1918_s6 }
 0x198   : > { %p1392_p7 = scmp.lt.s32.totalorder %s1390_s11, %s1386_s29 }
 0x199   : > { %p1388_p6 = pnand %p1387_p4, %p1936_p11 }
 0x19a   : > { %p1393_p12 = por %p1392_p7, %p1391_p3 }
 0x19b   : > { %p1389_p8 = pneg %p1388_p6 }
 0x19d   : > { %p1394_p10 = pnand %p1393_p12, %p1389_p8 }
 0x19f   : > { %1397 = shalt.err (!%p1394_p10)
}
 0x1a0   : > { %1142 = dma.vmem_to_hbm [thread:$0]  (%p1936_p11), %s1846_s20, 32, %s1844_s10, %s758_s14  }
 0x1a1 PF: > { %s828_s25 = sand.u32 1, %s1436_s21   ;;  %p1938_p2 = scmp.ne.s32.totalorder %s1926_s28, 0 }
 0x1a2   : > { %p1939_p13 = scmp.ge.s32.totalorder %s1448_s24, 2  ;;  %s829_s12 = scalar_lea.sflag [#allocation4], %s828_s25 }
 0x1a4   : > { %p1156_p0 = pnand %p1939_p13, %p1938_p2 }
 0x1a6   : > { %p1157_p5 = pneg %p1156_p0 }
 0x1a8   : > { %1423 = dma.done.wait (%p1157_p5), %s829_s12, 512  }
 0x1a9   : > { %1425 = vsyncadd (%p1157_p5), %s829_s12, 4294966784  ;;  %s1940_s7 = sadd.s32 4294967294, %s1448_s24  }
 0x1aa   : > { %s837_s13 = sand.u32 1, %s1940_s7  }
 0x1ab   : > { %s838_s8 = scalar_lea.sflag [#allocation9], %s837_s13 }
 0x1ac   : > { %1427 = dma.done.wait (%p1157_p5), %s838_s8, 544  }
 0x1ad   : > { %1429 = vsyncadd (%p1157_p5), %s838_s8, 4294966752  ;;  %s856_s18 = scalar_lea.sflag [#allocation12], %s828_s25 }
 0x1ae   : > { %1431 = dma.done.wait (%p1157_p5), %s856_s18, 32  }
 0x1af   : > { %1433 = vsyncadd (%p1157_p5), %s856_s18, 4294967264  ;;  %p27_p11 = scmp.ge.s32.totalorder %s1554_s9, 4   ;;  %s1941_s21 = smov %s1440_s22 }
 0x1b0   : > { %s1942_s22 = smov %s1444_s23  ;;  %s1943_s23 = smov %s1571_s17 }
 0x1b1   : > { %s1944_s24 = smov %s1554_s9  ;;  %29 = sbr.rel (!%p27_p11) target bundleno = 10 (0xa), region = 130 }
 0x1b6   :  { %861 = vsyncpa [#allocation3], 1 }
 0x1b7   :  { %863 = vsyncpa [#allocation3 + $0x1], 1 }
 0x1b8   :  { %864 = vsyncpa [#allocation6], 1 }
 0x1b9   :  { %865 = vsyncpa [#allocation4], 1 }
 0x1ba   :  { %867 = vsyncpa [#allocation4 + $0x1], 1 }
 0x1bb   :  { %868 = vsyncpa [#allocation9], 1 }
 0x1bc   :  { %870 = vsyncpa [#allocation9 + $0x1], 1 }
 0x1bd   :  { %871 = vsyncpa [#allocation12], 1 }
 0x1be   :  { %873 = vsyncpa [#allocation12 + $0x1], 1 }

</bundles_post_ra>
